<compile_context>
chip_gen: v6e
topology: v6e:2x2x1
jax: 0.10.0
libtpu: 0.0.40
codegen_flags: <defaults>
</compile_context>

<pallas_src>
import jax
import jax.numpy as jnp
from jax.experimental import pallas as pl
from jax.experimental.pallas import tpu as pltpu

H1 = 128   # fc1 / fc5 width
H2 = 64    # fc2 / fc4 width


def _round_up(x, m):
    return ((x + m - 1) // m) * m


def _beta_vae_kernel(
    x_ref, eps_ref,
    w1_ref, w2_ref, wml_ref, w4_ref, w5_ref, w6_ref,
    bias_ref,
    out_ref,
):
    latent_dim = eps_ref.shape[1]
    L2 = 2 * latent_dim
    in_pad = w6_ref.shape[1]          # input_dim rounded up to 128 lanes

    # Bias slab: (8, lanes), one bias vector per sublane row at lane offset 0.
    bias = bias_ref[...]
    b1 = bias[0:1, :H1]
    b2 = bias[1:2, :H2]
    bml = bias[2:3, :L2]
    b4 = bias[3:4, :H2]
    b5 = bias[4:5, :H1]
    b6 = bias[5:6, :in_pad]

    x = x_ref[...]

    # ---- encode ----
    h = jnp.maximum(jnp.dot(x, w1_ref[...], preferred_element_type=jnp.float32) + b1, 0.0)
    h = jnp.maximum(jnp.dot(h, w2_ref[...], preferred_element_type=jnp.float32) + b2, 0.0)
    # fused mu|logvar projection: one MXU pass, one (B, 2L) slab
    ml = jnp.dot(h, wml_ref[...], preferred_element_type=jnp.float32) + bml
    mu = ml[:, :latent_dim]
    logvar = ml[:, latent_dim:]

    # ---- reparameterize: z = mu + eps * exp(0.5 * logvar) ----
    z = mu + eps_ref[...] * jnp.exp(0.5 * logvar)

    # ---- decode ----
    d = jnp.maximum(jnp.dot(z, w4_ref[...], preferred_element_type=jnp.float32) + b4, 0.0)
    d = jnp.maximum(jnp.dot(d, w5_ref[...], preferred_element_type=jnp.float32) + b5, 0.0)
    logits = jnp.dot(d, w6_ref[...], preferred_element_type=jnp.float32) + b6
    recon = jax.nn.sigmoid(logits)    # single logistic EUP op, numerically safe

    # Lane-aligned output: recon fills lanes [0, in_pad) (128-aligned,
    # unmasked store); mu|logvar start at the 128-aligned offset in_pad.
    out_ref[:, :in_pad] = recon
    out_ref[:, in_pad:] = ml


def beta_vae_forward(x, eps, params, *, tile_b=None):
    """BetaVAE forward: returns (recon, mu, logvar)."""
    B, input_dim = x.shape
    latent_dim = eps.shape[1]
    L2 = 2 * latent_dim
    in_pad = _round_up(input_dim, 128)     # lane-dense recon segment
    out_cols = in_pad + L2

    # ---- pack parameters in the wrapper (fewer, wider, aligned kernel inputs) ----
    wml = jnp.concatenate([params["wmu"], params["wlv"]], axis=1)          # (64, 2L)

    # fc6 padded to a full 128-lane output segment (pad cols give sigmoid(0)=0.5,
    # sliced off below).
    w6 = params["w6"]
    b6 = params["b6"]
    if in_pad != input_dim:
        w6 = jnp.pad(w6, ((0, 0), (0, in_pad - input_dim)))
        b6 = jnp.pad(b6, ((0, 0), (0, in_pad - input_dim)))

    # All biases in one (8, bias_lanes) slab: one vector per sublane row,
    # lane offset 0, zero-padded -> single DMA, no cross-lane unpack in-kernel.
    bias_lanes = _round_up(max(H1, H2, L2, in_pad), 128)
    pad_row = lambda v: jnp.pad(v, ((0, 0), (0, bias_lanes - v.shape[1])))
    bml_bias = jnp.concatenate([params["bmu"], params["blv"]], axis=1)
    bias = jnp.concatenate(
        [pad_row(params["b1"]), pad_row(params["b2"]), pad_row(bml_bias),
         pad_row(params["b4"]), pad_row(params["b5"]), pad_row(b6),
         jnp.zeros((2, bias_lanes), jnp.float32)],
        axis=0)                                                             # (8, lanes)

    # ---- batch tiling ----
    # VMEM is not a constraint here (~tile_b KB activations + ~100 KB weights);
    # minimize grid steps (0.35 us each).  For huge batches use MXU-fill tiles
    # (multiple of 256) which also gives >= 2 parallel steps for v7x's 2 TCs.
    if tile_b is None:
        if B <= 4096:
            tile_b = B
        else:
            tile_b = 4096
            while B % tile_b != 0:
                tile_b //= 2
    assert B % tile_b == 0, "batch must be divisible by tile_b"
    grid = (B // tile_b,)

    tiled = lambda i: (i, 0)   # x / eps / out follow the batch grid
    const = lambda i: (0, 0)   # weights & biases stay VMEM-resident

    out = pl.pallas_call(
        _beta_vae_kernel,
        out_shape=jax.ShapeDtypeStruct((B, out_cols), jnp.float32),
        grid=grid,
        in_specs=[
            pl.BlockSpec((tile_b, input_dim), tiled),       # x
            pl.BlockSpec((tile_b, latent_dim), tiled),      # eps
            pl.BlockSpec((input_dim, H1), const),           # w1
            pl.BlockSpec((H1, H2), const),                  # w2
            pl.BlockSpec((H2, L2), const),                  # wmu|wlv fused
            pl.BlockSpec((latent_dim, H2), const),          # w4
            pl.BlockSpec((H2, H1), const),                  # w5
            pl.BlockSpec((H1, in_pad), const),              # w6 (lane-padded)
            pl.BlockSpec((8, bias_lanes), const),           # all biases, (8,128) slab
        ],
        out_specs=pl.BlockSpec((tile_b, out_cols), tiled),
        compiler_params=pltpu.CompilerParams(
            dimension_semantics=("parallel",)),
    )(x, eps,
      params["w1"], params["w2"], wml, params["w4"], params["w5"], w6,
      bias)

    recon = out[:, :input_dim]
    mu = out[:, in_pad:in_pad + latent_dim]
    logvar = out[:, in_pad + latent_dim:]
    return recon, mu, logvar


def init_params(key, input_dim, latent_dim):
    """Deterministic synthetic parameter init (shapes from BetaVAE.__init__)."""
    dims = [
        ("w1", (input_dim, H1)), ("b1", (1, H1)),
        ("w2", (H1, H2)), ("b2", (1, H2)),
        ("wmu", (H2, latent_dim)), ("bmu", (1, latent_dim)),
        ("wlv", (H2, latent_dim)), ("blv", (1, latent_dim)),
        ("w4", (latent_dim, H2)), ("b4", (1, H2)),
        ("w5", (H2, H1)), ("b5", (1, H1)),
        ("w6", (H1, input_dim)), ("b6", (1, input_dim)),
    ]
    params = {}
    keys = jax.random.split(key, len(dims))
    for k, (name, shape) in zip(keys, dims):
        fan_in = shape[0] if name.startswith("w") else shape[1]
        scale = 1.0 / jnp.sqrt(jnp.float32(fan_in))
        params[name] = scale * jax.random.normal(k, shape, dtype=jnp.float32)
    return params


def beta_vae_reference(x, eps, p):
    """Pure-JAX reference of the same forward pass, for validation."""
    dot = lambda a, b: jnp.dot(a, b, precision=jax.lax.Precision.HIGHEST)
    h = jnp.maximum(dot(x, p["w1"]) + p["b1"], 0.0)
    h = jnp.maximum(dot(h, p["w2"]) + p["b2"], 0.0)
    mu = dot(h, p["wmu"]) + p["bmu"]
    logvar = dot(h, p["wlv"]) + p["blv"]
    z = mu + eps * jnp.exp(0.5 * logvar)
    d = jnp.maximum(dot(z, p["w4"]) + p["b4"], 0.0)
    d = jnp.maximum(dot(d, p["w5"]) + p["b5"], 0.0)
    recon = jax.nn.sigmoid(dot(d, p["w6"]) + p["b6"])
    return recon, mu, logvar


if __name__ == "__main__":
    key = jax.random.PRNGKey(0)
    k_param, k_x, k_eps = jax.random.split(key, 3)

    B = 8            # batch  (NOTE: this shape is launch/DMA-overhead bound;
    INPUT_DIM = 16   #  real throughput needs B in the hundreds-thousands)
    LATENT_DIM = 8
    # beta only affects loss_function, not forward(); not needed here.

    params = init_params(k_param, INPUT_DIM, LATENT_DIM)
    x = jax.random.uniform(k_x, (B, INPUT_DIM), dtype=jnp.float32)      # in [0,1) like BCE targets
    eps = jax.random.normal(k_eps, (B, LATENT_DIM), dtype=jnp.float32)  # reparam noise

    recon, mu, logvar = beta_vae_forward(x, eps, params)
    jax.block_until_ready((recon, mu, logvar))

    # sanity-check against pure-JAX reference (all paths exact f32 now)
    r_ref, mu_ref, lv_ref = beta_vae_reference(x, eps, params)
    assert jnp.allclose(mu, mu_ref, atol=1e-5, rtol=1e-5)
    assert jnp.allclose(logvar, lv_ref, atol=1e-5, rtol=1e-5)
    assert jnp.allclose(recon, r_ref, atol=1e-5, rtol=1e-5)

    print("KERNEL_OK")
</pallas_src>

<mosaic_0001>
module attributes {stable_mosaic.version = 11 : i64} {
  func.func @_beta_vae_kernel(%arg0: i32, %arg1: memref<8x16xf32, #tpu.memory_space<vmem>>, %arg2: memref<8x8xf32, #tpu.memory_space<vmem>>, %arg3: memref<16x128xf32, #tpu.memory_space<vmem>>, %arg4: memref<128x64xf32, #tpu.memory_space<vmem>>, %arg5: memref<64x16xf32, #tpu.memory_space<vmem>>, %arg6: memref<8x64xf32, #tpu.memory_space<vmem>>, %arg7: memref<64x128xf32, #tpu.memory_space<vmem>>, %arg8: memref<128x128xf32, #tpu.memory_space<vmem>>, %arg9: memref<8x128xf32, #tpu.memory_space<vmem>>, %arg10: memref<8x144xf32, #tpu.memory_space<vmem>>) attributes {dimension_semantics = [#tpu.dimension_semantics<parallel>], iteration_bounds = array<i64: 1>, scalar_prefetch = 0 : i64, scratch_operands = 0 : i64, tpu.core_type = #tpu.core_type<tc>, window_params = [{transform_indices = @transform_0, window_bounds = array<i64: 8, 16>}, {transform_indices = @transform_1, window_bounds = array<i64: 8, 8>}, {pipeline_mode = #tpu.pipeline_mode<synchronous>, transform_indices = @transform_2, window_bounds = array<i64: 16, 128>}, {pipeline_mode = #tpu.pipeline_mode<synchronous>, transform_indices = @transform_3, window_bounds = array<i64: 128, 64>}, {pipeline_mode = #tpu.pipeline_mode<synchronous>, transform_indices = @transform_4, window_bounds = array<i64: 64, 16>}, {pipeline_mode = #tpu.pipeline_mode<synchronous>, transform_indices = @transform_5, window_bounds = array<i64: 8, 64>}, {pipeline_mode = #tpu.pipeline_mode<synchronous>, transform_indices = @transform_6, window_bounds = array<i64: 64, 128>}, {pipeline_mode = #tpu.pipeline_mode<synchronous>, transform_indices = @transform_7, window_bounds = array<i64: 128, 128>}, {pipeline_mode = #tpu.pipeline_mode<synchronous>, transform_indices = @transform_8, window_bounds = array<i64: 8, 128>}, {transform_indices = @transform_9, window_bounds = array<i64: 8, 144>}]} {
    %c0 = arith.constant 0 : index
    %c0_0 = arith.constant 0 : index
    %0 = vector.load %arg9[%c0, %c0_0] : memref<8x128xf32, #tpu.memory_space<vmem>>, vector<8x128xf32>
    %1 = vector.extract_strided_slice %0 {offsets = [0, 0], sizes = [1, 128], strides = [1, 1]} : vector<8x128xf32> to vector<1x128xf32>
    %2 = vector.extract_strided_slice %0 {offsets = [1, 0], sizes = [1, 64], strides = [1, 1]} : vector<8x128xf32> to vector<1x64xf32>
    %3 = vector.extract_strided_slice %0 {offsets = [2, 0], sizes = [1, 16], strides = [1, 1]} : vector<8x128xf32> to vector<1x16xf32>
    %4 = vector.extract_strided_slice %0 {offsets = [3, 0], sizes = [1, 64], strides = [1, 1]} : vector<8x128xf32> to vector<1x64xf32>
    %5 = vector.extract_strided_slice %0 {offsets = [4, 0], sizes = [1, 128], strides = [1, 1]} : vector<8x128xf32> to vector<1x128xf32>
    %6 = vector.extract_strided_slice %0 {offsets = [5, 0], sizes = [1, 128], strides = [1, 1]} : vector<8x128xf32> to vector<1x128xf32>
    %c0_1 = arith.constant 0 : index
    %c0_2 = arith.constant 0 : index
    %7 = vector.load %arg1[%c0_1, %c0_2] : memref<8x16xf32, #tpu.memory_space<vmem>>, vector<8x16xf32>
    %c0_3 = arith.constant 0 : index
    %c0_4 = arith.constant 0 : index
    %8 = vector.load %arg3[%c0_3, %c0_4] : memref<16x128xf32, #tpu.memory_space<vmem>>, vector<16x128xf32>
    %cst = arith.constant dense<0.000000e+00> : vector<8x128xf32>
    %9 = tpu.matmul %7, %8, %cst {dimension_numbers = #tpu.dot_dimension_numbers<[1], [0], [0], [1], [0, 0, 1, 1], [], []>} : vector<8x16xf32>, vector<16x128xf32>, vector<8x128xf32> -> vector<8x128xf32>
    %10 = vector.broadcast %1 : vector<1x128xf32> to vector<8x128xf32>
    %11 = arith.addf %9, %10 : vector<8x128xf32>
    %cst_5 = arith.constant 0.000000e+00 : f32
    %12 = vector.broadcast %cst_5 : f32 to vector<8x128xf32>
    %13 = arith.maximumf %11, %12 : vector<8x128xf32>
    %c0_6 = arith.constant 0 : index
    %c0_7 = arith.constant 0 : index
    %14 = vector.load %arg4[%c0_6, %c0_7] : memref<128x64xf32, #tpu.memory_space<vmem>>, vector<128x64xf32>
    %cst_8 = arith.constant dense<0.000000e+00> : vector<8x64xf32>
    %15 = tpu.matmul %13, %14, %cst_8 {dimension_numbers = #tpu.dot_dimension_numbers<[1], [0], [0], [1], [0, 0, 1, 1], [], []>} : vector<8x128xf32>, vector<128x64xf32>, vector<8x64xf32> -> vector<8x64xf32>
    %16 = vector.broadcast %2 : vector<1x64xf32> to vector<8x64xf32>
    %17 = arith.addf %15, %16 : vector<8x64xf32>
    %cst_9 = arith.constant 0.000000e+00 : f32
    %18 = vector.broadcast %cst_9 : f32 to vector<8x64xf32>
    %19 = arith.maximumf %17, %18 : vector<8x64xf32>
    %c0_10 = arith.constant 0 : index
    %c0_11 = arith.constant 0 : index
    %20 = vector.load %arg5[%c0_10, %c0_11] : memref<64x16xf32, #tpu.memory_space<vmem>>, vector<64x16xf32>
    %cst_12 = arith.constant dense<0.000000e+00> : vector<8x16xf32>
    %21 = tpu.matmul %19, %20, %cst_12 {dimension_numbers = #tpu.dot_dimension_numbers<[1], [0], [0], [1], [0, 0, 1, 1], [], []>} : vector<8x64xf32>, vector<64x16xf32>, vector<8x16xf32> -> vector<8x16xf32>
    %22 = vector.broadcast %3 : vector<1x16xf32> to vector<8x16xf32>
    %23 = arith.addf %21, %22 : vector<8x16xf32>
    %24 = vector.extract_strided_slice %23 {offsets = [0, 0], sizes = [8, 8], strides = [1, 1]} : vector<8x16xf32> to vector<8x8xf32>
    %25 = vector.extract_strided_slice %23 {offsets = [0, 8], sizes = [8, 8], strides = [1, 1]} : vector<8x16xf32> to vector<8x8xf32>
    %c0_13 = arith.constant 0 : index
    %c0_14 = arith.constant 0 : index
    %26 = vector.load %arg2[%c0_13, %c0_14] : memref<8x8xf32, #tpu.memory_space<vmem>>, vector<8x8xf32>
    %cst_15 = arith.constant 5.000000e-01 : f32
    %27 = vector.broadcast %cst_15 : f32 to vector<8x8xf32>
    %28 = arith.mulf %27, %25 : vector<8x8xf32>
    %29 = math.exp %28 : vector<8x8xf32>
    %30 = arith.mulf %26, %29 : vector<8x8xf32>
    %31 = arith.addf %24, %30 : vector<8x8xf32>
    %c0_16 = arith.constant 0 : index
    %c0_17 = arith.constant 0 : index
    %32 = vector.load %arg6[%c0_16, %c0_17] : memref<8x64xf32, #tpu.memory_space<vmem>>, vector<8x64xf32>
    %cst_18 = arith.constant dense<0.000000e+00> : vector<8x64xf32>
    %33 = tpu.matmul %31, %32, %cst_18 {dimension_numbers = #tpu.dot_dimension_numbers<[1], [0], [0], [1], [0, 0, 1, 1], [], []>} : vector<8x8xf32>, vector<8x64xf32>, vector<8x64xf32> -> vector<8x64xf32>
    %34 = vector.broadcast %4 : vector<1x64xf32> to vector<8x64xf32>
    %35 = arith.addf %33, %34 : vector<8x64xf32>
    %cst_19 = arith.constant 0.000000e+00 : f32
    %36 = vector.broadcast %cst_19 : f32 to vector<8x64xf32>
    %37 = arith.maximumf %35, %36 : vector<8x64xf32>
    %c0_20 = arith.constant 0 : index
    %c0_21 = arith.constant 0 : index
    %38 = vector.load %arg7[%c0_20, %c0_21] : memref<64x128xf32, #tpu.memory_space<vmem>>, vector<64x128xf32>
    %cst_22 = arith.constant dense<0.000000e+00> : vector<8x128xf32>
    %39 = tpu.matmul %37, %38, %cst_22 {dimension_numbers = #tpu.dot_dimension_numbers<[1], [0], [0], [1], [0, 0, 1, 1], [], []>} : vector<8x64xf32>, vector<64x128xf32>, vector<8x128xf32> -> vector<8x128xf32>
    %40 = vector.broadcast %5 : vector<1x128xf32> to vector<8x128xf32>
    %41 = arith.addf %39, %40 : vector<8x128xf32>
    %cst_23 = arith.constant 0.000000e+00 : f32
    %42 = vector.broadcast %cst_23 : f32 to vector<8x128xf32>
    %43 = arith.maximumf %41, %42 : vector<8x128xf32>
    %c0_24 = arith.constant 0 : index
    %c0_25 = arith.constant 0 : index
    %44 = vector.load %arg8[%c0_24, %c0_25] : memref<128x128xf32, #tpu.memory_space<vmem>>, vector<128x128xf32>
    %cst_26 = arith.constant dense<0.000000e+00> : vector<8x128xf32>
    %45 = tpu.matmul %43, %44, %cst_26 {dimension_numbers = #tpu.dot_dimension_numbers<[1], [0], [0], [1], [0, 0, 1, 1], [], []>} : vector<8x128xf32>, vector<128x128xf32>, vector<8x128xf32> -> vector<8x128xf32>
    %46 = vector.broadcast %6 : vector<1x128xf32> to vector<8x128xf32>
    %47 = arith.addf %45, %46 : vector<8x128xf32>
    %48 = arith.negf %47 : vector<8x128xf32>
    %49 = math.exp %48 : vector<8x128xf32>
    %cst_27 = arith.constant 1.000000e+00 : f32
    %50 = vector.broadcast %cst_27 : f32 to vector<8x128xf32>
    %51 = arith.addf %50, %49 : vector<8x128xf32>
    %52 = arith.divf %50, %51 : vector<8x128xf32>
    %c0_28 = arith.constant 0 : index
    %c0_29 = arith.constant 0 : index
    %53 = vector.load %arg10[%c0_28, %c0_29] : memref<8x144xf32, #tpu.memory_space<vmem>>, vector<8x128xf32>
    tpu.vector_store %arg10[%c0_28, %c0_29], %52 {strides = array<i32>} : memref<8x144xf32, #tpu.memory_space<vmem>>, vector<8x128xf32>,
    %c0_30 = arith.constant 0 : index
    %c128 = arith.constant 128 : index
    %54 = vector.load %arg10[%c0_30, %c128] : memref<8x144xf32, #tpu.memory_space<vmem>>, vector<8x16xf32>
    tpu.vector_store %arg10[%c0_30, %c128], %23 {strides = array<i32>} : memref<8x144xf32, #tpu.memory_space<vmem>>, vector<8x16xf32>,
    return
  }
  func.func @transform_0(%arg0: i32) -> (i32, i32) {
    %c0_i32 = arith.constant 0 : i32
    %c0_i32_0 = arith.constant 0 : i32
    return %arg0, %c0_i32 : i32, i32
  }
  func.func @transform_1(%arg0: i32) -> (i32, i32) {
    %c0_i32 = arith.constant 0 : i32
    %c0_i32_0 = arith.constant 0 : i32
    return %arg0, %c0_i32 : i32, i32
  }
  func.func @transform_2(%arg0: i32) -> (i32, i32) {
    %c0_i32 = arith.constant 0 : i32
    %c0_i32_0 = arith.constant 0 : i32
    %c0_i32_1 = arith.constant 0 : i32
    return %c0_i32, %c0_i32_0 : i32, i32
  }
  func.func @transform_3(%arg0: i32) -> (i32, i32) {
    %c0_i32 = arith.constant 0 : i32
    %c0_i32_0 = arith.constant 0 : i32
    %c0_i32_1 = arith.constant 0 : i32
    return %c0_i32, %c0_i32_0 : i32, i32
  }
  func.func @transform_4(%arg0: i32) -> (i32, i32) {
    %c0_i32 = arith.constant 0 : i32
    %c0_i32_0 = arith.constant 0 : i32
    %c0_i32_1 = arith.constant 0 : i32
    return %c0_i32, %c0_i32_0 : i32, i32
  }
  func.func @transform_5(%arg0: i32) -> (i32, i32) {
    %c0_i32 = arith.constant 0 : i32
    %c0_i32_0 = arith.constant 0 : i32
    %c0_i32_1 = arith.constant 0 : i32
    return %c0_i32, %c0_i32_0 : i32, i32
  }
  func.func @transform_6(%arg0: i32) -> (i32, i32) {
    %c0_i32 = arith.constant 0 : i32
    %c0_i32_0 = arith.constant 0 : i32
    %c0_i32_1 = arith.constant 0 : i32
    return %c0_i32, %c0_i32_0 : i32, i32
  }
  func.func @transform_7(%arg0: i32) -> (i32, i32) {
    %c0_i32 = arith.constant 0 : i32
    %c0_i32_0 = arith.constant 0 : i32
    %c0_i32_1 = arith.constant 0 : i32
    return %c0_i32, %c0_i32_0 : i32, i32
  }
  func.func @transform_8(%arg0: i32) -> (i32, i32) {
    %c0_i32 = arith.constant 0 : i32
    %c0_i32_0 = arith.constant 0 : i32
    %c0_i32_1 = arith.constant 0 : i32
    return %c0_i32, %c0_i32_0 : i32, i32
  }
  func.func @transform_9(%arg0: i32) -> (i32, i32) {
    %c0_i32 = arith.constant 0 : i32
    %c0_i32_0 = arith.constant 0 : i32
    return %arg0, %c0_i32 : i32, i32
  }
}

</mosaic_0001>

<bundles_post_ra>
// kernel: tpu_custom_call.1
= control target key start
LH: loop header
LB: loop body
LE: loop exit
PB: predicated region body
PF: predicated region fallthrough
CT: control target
= control target key end

     0   :  { %14 = vsyncpa [#allocation3], 0  ;;  %s1204_s0 = inlined_call_operand.hbm [shape: f32[8,16], index: 0, kind: input, shape index: {}]   ;;  %s1205_s1 = inlined_call_operand.hbm [shape: f32[8,8], index: 1, kind: input, shape index: {}]   ;;  %s1206_s2 = inlined_call_operand.vmem [shape: f32[16,128], index: 2, kind: input, shape index: {}]   ;;  %s1207_s3 = inlined_call_operand.vmem [shape: f32[128,64], index: 3, kind: input, shape index: {}]   ;;  %s1208_s4 = inlined_call_operand.vmem [shape: f32[64,16], index: 4, kind: input, shape index: {}]   ;;  %s1209_s5 = inlined_call_operand.hbm [shape: f32[8,64], index: 5, kind: input, shape index: {}]   ;;  %s1210_s6 = inlined_call_operand.vmem [shape: f32[64,128], index: 6, kind: input, shape index: {}]   ;;  %s1211_s7 = inlined_call_operand.vmem [shape: f32[128,128], index: 7, kind: input, shape index: {}]   ;;  %s1212_s8 = inlined_call_operand.vmem [shape: f32[8,128], index: 8, kind: input, shape index: {}]   ;;  %s1213_s9 = inlined_call_operand.hbm [shape: f32[8,144], index: 9, kind: output, shape index: {}]  }
   0x1   :  { %15 = vsyncpa [#allocation6], 0 }
   0x2   :  { %16 = vsyncpa [#allocation4], 0  ;;  %s899_s30 = smov [#allocation5]   ;;  %s900_s11 = smov [#allocation2]  }
   0x3   :  { %s33_s10 = sshll.u32 %s899_s30, 4  ;;  %s23_s12 = sshll.u32 %s900_s11, 4  ;;  %s34_s10 = int_to_ptr.vmem [resolvable:$true] %s33_s10  ;;  %s24_s12 = int_to_ptr.vmem [resolvable:$true] %s23_s12 }
   0x4   :  { %s821_s13 = scalar_lea.vmem %s34_s10, 128  ;;  %p826_p1 = scmp.lt.s32.totalorder %s34_s10, %s34_s10 }
   0x5   :  { %p822_p0 = scmp.ne.s32.totalorder %s34_s10, %s821_s13  ;;  %p827_p2 = scmp.lt.s32.totalorder %s821_s13, %s821_s13 }
   0x7   :  { %p828_p3 = por %p827_p2, %p826_p1 }
   0x9   :  { %p829_p4 = pnand %p828_p3, %p822_p0 }
   0xb   :  { %832 = shalt.err (!%p829_p4)
}
   0xc   :  { %36 = dma.hbm_to_vmem [thread:$0]  %s1205_s1, 128, %s34_s10, [#allocation6]  }
   0xd   :  { %s841_s16 = scalar_lea.vmem %s24_s12, 128  ;;  %p846_p6 = scmp.lt.s32.totalorder %s24_s12, %s24_s12 }
   0xe   :  { %p842_p5 = scmp.ne.s32.totalorder %s24_s12, %s841_s16  ;;  %p847_p7 = scmp.lt.s32.totalorder %s841_s16, %s841_s16 }
  0x10   :  { %p848_p8 = por %p847_p7, %p846_p6 }
  0x12   :  { %p849_p9 = pnand %p848_p8, %p842_p5 }
  0x14   :  { %852 = shalt.err (!%p849_p9)
}
  0x15   :  { %26 = dma.hbm_to_vmem [thread:$0]  %s1204_s0, 128, %s24_s12, [#allocation3]  }
  0x16   :  { %s901_s19 = smov [#allocation7]  }
  0x17   :  { %s49_s20 = sshll.u32 %s901_s19, 4  ;;  %s50_s20 = int_to_ptr.vmem [resolvable:$true] %s49_s20 }
  0x18   :  { %s861_s21 = scalar_lea.vmem %s50_s20, 128  ;;  %p866_p11 = scmp.lt.s32.totalorder %s50_s20, %s50_s20 }
  0x19   :  { %p862_p10 = scmp.ne.s32.totalorder %s50_s20, %s861_s21  ;;  %p867_p12 = scmp.lt.s32.totalorder %s861_s21, %s861_s21 }
  0x1b   :  { %p868_p13 = por %p867_p12, %p866_p11 }
  0x1d   :  { %p869_p0 = pnand %p868_p13, %p862_p10 }
  0x1f   :  { %872 = shalt.err (!%p869_p0)
}
  0x20   :  { %52 = dma.hbm_to_vmem [thread:$0]  %s1209_s5, 128, %s50_s20, [#allocation6]  }
  0x21   :  { %893 = dma.done.wait [#allocation3], 128  }
  0x22   :  { %894 = vsyncadd [#allocation3], 4294967168 }
  0x23   :  { %895 = dma.done.wait [#allocation6], 256  }
  0x24   :  { %896 = vsyncadd [#allocation6], 4294967040  ;;  %v902_v0 = vmov 0.0   ;;  %vm903_vm0 = vmmov 0   ;;  %v71_v1 = vld [vmem:[%s1206_s2 + $0x8] sm:$0xff]  ;;  %v70_v2 = vld [vmem:[%s1206_s2] sm:$0xff]  ;;  %v72_v25 = vlaneseq }
  0x25   :  { %680 = vmatprep.subr.mxu0 %v902_v0  ;;  %684 = vmatprep.mubr.msk.f32.mxu0 %vm903_vm0, %v902_v0  ;;  %v69_v3 = vld [vmem:[#allocation2] sm:$0xff]  ;;  %vm76_vm1 = vcmask 130048   ;;  %v166_v4 = vld [vmem:[%s1207_s3 + $0x78] sm:$0xff]  ;;  %v165_v5 = vld [vmem:[%s1207_s3 + $0x70] sm:$0xff]  ;;  %vm254_vm2 = vcmask 523264   ;;  %vm343_vm3 = vcmask 64512  }
  0x26   :  { %687 = vmatprep.subr.mxu1 %v902_v0  ;;  %719 = vmatprep.mubr.msk.f32.mxu1 %vm903_vm0, %v902_v0  ;;  %v164_v6 = vld [vmem:[%s1207_s3 + $0x68] sm:$0xff]  ;;  %v163_v7 = vld [vmem:[%s1207_s3 + $0x60] sm:$0xff]  ;;  %v162_v8 = vld [vmem:[%s1207_s3 + $0x58] sm:$0xff]  ;;  %v1066_v26 = vshrl.u32 %v72_v25, 7 }
  0x27   :  { %681 = vmatpush3.msra.mxu0 %v71_v1  ;;  %688 = vmatpush3.msra.mxu1 %v166_v4  ;;  %v161_v9 = vld [vmem:[%s1207_s3 + $0x50] sm:$0xff]  ;;  %v160_v10 = vld [vmem:[%s1207_s3 + $0x48] sm:$0xff]  ;;  %v159_v11 = vld [vmem:[%s1207_s3 + $0x40] sm:$0xff] }
  0x28   :  { %682 = vmatprep.subr.mxu0 %v902_v0  ;;  %689 = vmatprep.subr.mxu1 %v902_v0  ;;  %v158_v12 = vld [vmem:[%s1207_s3 + $0x38] sm:$0xff]  ;;  %v157_v13 = vld [vmem:[%s1207_s3 + $0x30] sm:$0xff]  ;;  %v156_v14 = vld [vmem:[%s1207_s3 + $0x28] sm:$0xff]  ;;  %v74_v27 = vsub.s32 0, %v1066_v26  ;;  %v169_v37 = vsub.s32 1, %v1066_v26  ;;  %v252_v43 = vsub.s32 2, %v1066_v26 }
  0x29   :  { %683 = vmatpush3.msra.mxu0 %v70_v2  ;;  %690 = vmatpush3.msra.mxu1 %v165_v5  ;;  %v155_v15 = vld [vmem:[%s1207_s3 + $0x20] sm:$0xff]  ;;  %v154_v16 = vld [vmem:[%s1207_s3 + $0x18] sm:$0xff]  ;;  %v153_v17 = vld [vmem:[%s1207_s3 + $0x10] sm:$0xff] }
  0x2a   :  { %685 = vmatmul.mubr.msk.f32.vlgmr.msra.gmra.mxu0 %vm76_vm1, %v69_v3  ;;  %691 = vmatprep.subr.mxu1 %v902_v0  ;;  %v152_v18 = vld [vmem:[%s1207_s3 + $0x8] sm:$0xff]  ;;  %v151_v19 = vld [vmem:[%s1207_s3] sm:$0xff]  ;;  %v249_v20 = vld [vmem:[%s1208_s4 + $0x38] sm:$0xff] }
  0x2b   :  { %722 = vmatprep.subr.mxu0 %v902_v0  ;;  %692 = vmatpush3.msra.mxu1 %v164_v6  ;;  %v248_v21 = vld [vmem:[%s1208_s4 + $0x30] sm:$0xff]  ;;  %v247_v22 = vld [vmem:[%s1208_s4 + $0x28] sm:$0xff]  ;;  %v246_v23 = vld [vmem:[%s1208_s4 + $0x20] sm:$0xff] }
  0x2c   :  { %738 = vmatprep.mubr.msk.f32.mxu0 %vm903_vm0, %v902_v0  ;;  %693 = vmatprep.subr.mxu1 %v902_v0  ;;  %v245_v24 = vld [vmem:[%s1208_s4 + $0x18] sm:$0xff]  ;;  %v1072_v28 = vld [vmem:[%s1212_s8] sm:$0xff]  ;;  %v244_v34 = vld [vmem:[%s1208_s4 + $0x10] sm:$0xff] }
  0x2d   :  { %694 = vmatpush3.msra.mxu1 %v163_v7  ;;  %723 = vmatpush3.msra.mxu0 %v249_v20  ;;  %v75_v29 = vrot.slane %v1072_v28, %v74_v27  ;;  %v243_v35 = vld [vmem:[%s1208_s4 + $0x8] sm:$0xff]  ;;  %v242_v36 = vld [vmem:[%s1208_s4] sm:$0xff]  ;;  %v170_v38 = vrot.slane %v1072_v28, %v169_v37  ;;  %v253_v44 = vrot.slane %v1072_v28, %v252_v43  ;;  %v338_v50 = vld [vmem:[#allocation7] sm:$0xff]  ;;  %s904_s4 = smov 120  }
  0x2e   :  { %695 = vmatprep.subr.mxu1 %v902_v0  ;;  %724 = vmatprep.subr.mxu0 %v902_v0  ;;  %v328_v52 = vld [vmem:[#allocation5] sm:$0xff]  ;;  %v425_v56 = vld [vmem:[%s1210_s6 + $0x38] sm:$0xff]  ;;  %v424_v57 = vld [vmem:[%s1210_s6 + $0x30] sm:$0xff] }
  0x2f   :  { %696 = vmatpush3.msra.mxu1 %v162_v8  ;;  %725 = vmatpush3.msra.mxu0 %v248_v21  ;;  %v423_v58 = vld [vmem:[%s1210_s6 + $0x28] sm:$0xff]  ;;  %v422_v59 = vld [vmem:[%s1210_s6 + $0x20] sm:$0xff]  ;;  %v421_v60 = vld [vmem:[%s1210_s6 + $0x18] sm:$0xff] }
  0x30   :  { %697 = vmatprep.subr.mxu1 %v902_v0  ;;  %726 = vmatprep.subr.mxu0 %v902_v0  ;;  %v420_v61 = vld [vmem:[%s1210_s6 + $0x10] sm:$0xff]  ;;  %v419_v62 = vld [vmem:[%s1210_s6 + $0x8] sm:$0xff]  ;;  %v418_v63 = vld [vmem:[%s1210_s6] sm:$0xff] }
  0x31   :  { %698 = vmatpush3.msra.mxu1 %v161_v9  ;;  %727 = vmatpush3.msra.mxu0 %v247_v22  ;;  %v519_v1 = vld [vmem:[%s1211_s7 + $0x78] sm:$0xff]  ;;  %v518_v2 = vld [vmem:[%s1211_s7 + $0x70] sm:$0xff]  ;;  %v517_v3 = vld [vmem:[%s1211_s7 + $0x68] sm:$0xff] }
  0x32   :  { %699 = vmatprep.subr.mxu1 %v902_v0  ;;  %728 = vmatprep.subr.mxu0 %v902_v0  ;;  %v516_v4 = vld [vmem:[%s1211_s7 + $0x60] sm:$0xff]  ;;  %v515_v5 = vld [vmem:[%s1211_s7 + $0x58] sm:$0xff]  ;;  %v514_v6 = vld [vmem:[%s1211_s7 + $0x50] sm:$0xff] }
  0x33   :  { %700 = vmatpush3.msra.mxu1 %v160_v10  ;;  %729 = vmatpush3.msra.mxu0 %v246_v23  ;;  %v513_v7 = vld [vmem:[%s1211_s7 + $0x48] sm:$0xff]  ;;  %v512_v8 = vld [vmem:[%s1211_s7 + $0x40] sm:$0xff]  ;;  %v511_v9 = vld [vmem:[%s1211_s7 + $0x38] sm:$0xff]  ;;  %v428_v23 = vsub.s32 4, %v1066_v26 }
  0x34   :  { %701 = vmatprep.subr.mxu1 %v902_v0  ;;  %730 = vmatprep.subr.mxu0 %v902_v0  ;;  %v510_v10 = vld [vmem:[%s1211_s7 + $0x30] sm:$0xff]  ;;  %v505_v21 = vld [vmem:[%s1211_s7 + $0x8] sm:$0xff]  ;;  %v504_v22 = vld [vmem:[%s1211_s7] sm:$0xff] }
  0x35   :  { %702 = vmatpush3.msra.mxu1 %v159_v11  ;;  %731 = vmatpush3.msra.mxu0 %v245_v24  ;;  %v509_v11 = vld [vmem:[%s1211_s7 + $0x28] sm:$0xff]  ;;  %v506_v20 = vld [vmem:[%s1211_s7 + $0x10] sm:$0xff]  ;;  %v429_v24 = vrot.slane %v1072_v28, %v428_v23 }
  0x36   :  { %703 = vmatprep.subr.mxu1 %v902_v0  ;;  %732 = vmatprep.subr.mxu0 %v902_v0 }
  0x37   :  { %704 = vmatpush3.msra.mxu1 %v158_v12  ;;  %733 = vmatpush3.msra.mxu0 %v244_v34  ;;  %v508_v12 = vld [vmem:[%s1211_s7 + $0x20] sm:$0xff] }
  0x38   :  { %705 = vmatprep.subr.mxu1 %v902_v0  ;;  %734 = vmatprep.subr.mxu0 %v902_v0 }
  0x39   :  { %706 = vmatpush3.msra.mxu1 %v157_v13  ;;  %735 = vmatpush3.msra.mxu0 %v243_v35  ;;  %v507_v13 = vld [vmem:[%s1211_s7 + $0x18] sm:$0xff]  ;;  %s905_s7 = smov [#allocation8]  }
  0x3a   :  { %707 = vmatprep.subr.mxu1 %v902_v0  ;;  %736 = vmatprep.subr.mxu0 %v902_v0  ;;  %s608_s19 = sshll.u32 %s905_s7, 4  ;;  %s609_s19 = int_to_ptr.vmem [resolvable:$true] %s608_s19 }
  0x3b   :  { %708 = vmatpush3.msra.mxu1 %v156_v14  ;;  %737 = vmatpush3.msra.mxu0 %v242_v36  ;;  %v341_v14 = vsub.s32 3, %v1066_v26  ;;  %s873_s20 = scalar_lea.vmem %s609_s19, 256  ;;  %p878_p2 = scmp.lt.s32.totalorder %s609_s19, %s609_s19 }
  0x3c   :  { %709 = vmatprep.subr.mxu1 %v902_v0  ;;  %741 = vmatprep.subr.mxu0 %v902_v0  ;;  %p874_p1 = scmp.ne.s32.totalorder %s609_s19, %s873_s20  ;;  %p879_p3 = scmp.lt.s32.totalorder %s873_s20, %s873_s20 }
  0x3d   :  { %710 = vmatpush3.msra.mxu1 %v155_v15  ;;  %v342_v15 = vrot.slane %v1072_v28, %v341_v14 }
  0x3e   :  { %711 = vmatprep.subr.mxu1 %v902_v0  ;;  %p880_p4 = por %p879_p3, %p878_p2 }
  0x3f   :  { %712 = vmatpush3.msra.mxu1 %v154_v16 }
  0x40   :  { %713 = vmatprep.subr.mxu1 %v902_v0  ;;  %p881_p5 = pnand %p880_p4, %p874_p1 }
  0x41   :  { %714 = vmatpush3.msra.mxu1 %v153_v17 }
  0x42   :  { %715 = vmatprep.subr.mxu1 %v902_v0 }
  0x43   :  { %716 = vmatpush3.msra.mxu1 %v152_v18 }
  0x44   :  { %717 = vmatprep.subr.mxu1 %v902_v0 }
  0x45   :  { %718 = vmatpush3.msra.mxu1 %v151_v19 }
  0x46   :  { %765 = vmatprep.subr.mxu1 %v902_v0 }
  0xea   :  { %v146_v30 = vpop.f32.mrf.mxu0 }
  0xeb   :  { %v147_v31 = vadd.f32 %v146_v30, %v75_v29 }
  0xec   :  { %v686_v32 = vpop.f32.mrf.mxu0 }
  0xed   :  { %v150_v33 = vmax.f32 %v147_v31, 0.0  ;;  %v522_v31 = vsub.s32 5, %v1066_v26 }
  0xef   :  { %720 = vmatmul.mubr.f32.vlgmr.msra.gmra.mxu1 %v150_v33  ;;  %v523_v32 = vrot.slane %v1072_v28, %v522_v31 }
  0xf0   :  { %797 = vmatprep.mubr.msk.f32.mxu1 %vm903_vm0, %v902_v0  ;;  %766 = vmatpush3.msra.mxu1 %v519_v1 }
  0xf1   :  { %767 = vmatprep.subr.mxu1 %v902_v0 }
  0xf2   :  { %768 = vmatpush3.msra.mxu1 %v518_v2 }
  0xf3   :  { %769 = vmatprep.subr.mxu1 %v902_v0 }
  0xf4   :  { %770 = vmatpush3.msra.mxu1 %v517_v3 }
  0xf5   :  { %771 = vmatprep.subr.mxu1 %v902_v0 }
  0xf6   :  { %772 = vmatpush3.msra.mxu1 %v516_v4 }
  0xf7   :  { %773 = vmatprep.subr.mxu1 %v902_v0 }
  0xf8   :  { %774 = vmatpush3.msra.mxu1 %v515_v5 }
  0xf9   :  { %775 = vmatprep.subr.mxu1 %v902_v0 }
  0xfa   :  { %776 = vmatpush3.msra.mxu1 %v514_v6 }
  0xfb   :  { %777 = vmatprep.subr.mxu1 %v902_v0 }
  0xfc   :  { %778 = vmatpush3.msra.mxu1 %v513_v7 }
  0xfd   :  { %779 = vmatprep.subr.mxu1 %v902_v0 }
  0xfe   :  { %780 = vmatpush3.msra.mxu1 %v512_v8 }
  0xff   :  { %781 = vmatprep.subr.mxu1 %v902_v0 }
 0x100   :  { %782 = vmatpush3.msra.mxu1 %v511_v9 }
 0x101   :  { %783 = vmatprep.subr.mxu1 %v902_v0 }
 0x102   :  { %784 = vmatpush3.msra.mxu1 %v510_v10 }
 0x103   :  { %785 = vmatprep.subr.mxu1 %v902_v0 }
 0x104   :  { %786 = vmatpush3.msra.mxu1 %v509_v11 }
 0x105   :  { %787 = vmatprep.subr.mxu1 %v902_v0 }
 0x106   :  { %788 = vmatpush3.msra.mxu1 %v508_v12 }
 0x107   :  { %789 = vmatprep.subr.mxu1 %v902_v0 }
 0x108   :  { %790 = vmatpush3.msra.mxu1 %v507_v13 }
 0x109   :  { %791 = vmatprep.subr.mxu1 %v902_v0 }
 0x10a   :  { %792 = vmatpush3.msra.mxu1 %v506_v20 }
 0x10b   :  { %793 = vmatprep.subr.mxu1 %v902_v0 }
 0x10c   :  { %794 = vmatpush3.msra.mxu1 %v505_v21 }
 0x10d   :  { %795 = vmatprep.subr.mxu1 %v902_v0 }
 0x10e   :  { %796 = vmatpush3.msra.mxu1 %v504_v22 }
 0x1af   :  { %v237_v39 = vpop.f32.mrf.mxu1 }
 0x1b0   :  { %v238_v40 = vadd.f32 %v237_v39, %v170_v38 }
 0x1b1   :  { %v721_v41 = vpop.f32.mrf.mxu1 }
 0x1b2   :  { %v241_v42 = vmax.f32 %v238_v40, 0.0 }
 0x1b4   :  { %739 = vmatmul.mubr.msk.f32.vlgmr.msra.gmra.mxu0 %vm254_vm2, %v241_v42 }
 0x1b5   :  { %743 = vmatprep.mubr.msk.f32.mxu0 %vm903_vm0, %v902_v0  ;;  %742 = vmatpush3.msra.mxu0 %v338_v50 }
 0x1b6   :  { %746 = vmatprep.subr.mxu0 %v902_v0 }
 0x274   :  { %v324_v45 = vpop.f32.mrf.mxu0 }
 0x275   :  { %v325_v46 = vadd.f32 %v324_v45, %v253_v44 }
 0x276   :  { %v740_v47 = vpop.f32.mrf.mxu0 }
 0x277   :  { %v329_v48 = vmul.f32 0.5, %v325_v46  ;;  %601 = vst.msk [vmem:[#allocation8 + $0x8] sm:$0xff] %vm76_vm1, %v325_v46 }
 0x279   :  { %v330_v49 = vmul.f32 1.442695, %v329_v48 }
 0x27b   :  { %807 = vpow2.f32 %v330_v49 }
 0x288   :  { %v808_v51 = vpop.eup %807 }
 0x289   :  { %333 = vrot.lane.b32.xlu0 %v808_v51, %s904_s4 }
 0x2fb   :  { %v334_v53 = vpop.permute.xlu0 %333 }
 0x2fc   :  { %v336_v54 = vmul.f32 %v334_v53, %v328_v52 }
 0x2fe   :  { %v337_v55 = vadd.f32 %v336_v54, %v325_v46 }
 0x300   :  { %744 = vmatmul.mubr.msk.f32.vlgmr.msra.gmra.mxu0 %vm343_vm3, %v337_v55 }
 0x301   :  { %747 = vmatpush3.msra.mxu0 %v425_v56  ;;  %762 = vmatprep.mubr.msk.f32.mxu0 %vm903_vm0, %v902_v0 }
 0x302   :  { %748 = vmatprep.subr.mxu0 %v902_v0 }
 0x303   :  { %749 = vmatpush3.msra.mxu0 %v424_v57 }
 0x304   :  { %750 = vmatprep.subr.mxu0 %v902_v0 }
 0x305   :  { %751 = vmatpush3.msra.mxu0 %v423_v58 }
 0x306   :  { %752 = vmatprep.subr.mxu0 %v902_v0 }
 0x307   :  { %753 = vmatpush3.msra.mxu0 %v422_v59 }
 0x308   :  { %754 = vmatprep.subr.mxu0 %v902_v0 }
 0x309   :  { %755 = vmatpush3.msra.mxu0 %v421_v60 }
 0x30a   :  { %756 = vmatprep.subr.mxu0 %v902_v0 }
 0x30b   :  { %757 = vmatpush3.msra.mxu0 %v420_v61 }
 0x30c   :  { %758 = vmatprep.subr.mxu0 %v902_v0 }
 0x30d   :  { %759 = vmatpush3.msra.mxu0 %v419_v62 }
 0x30e   :  { %760 = vmatprep.subr.mxu0 %v902_v0 }
 0x30f   :  { %761 = vmatpush3.msra.mxu0 %v418_v63 }
 0x3c0   :  { %v413_v16 = vpop.f32.mrf.mxu0 }
 0x3c1   :  { %v414_v17 = vadd.f32 %v413_v16, %v342_v15 }
 0x3c2   :  { %v745_v18 = vpop.f32.mrf.mxu0 }
 0x3c3   :  { %v417_v19 = vmax.f32 %v414_v17, 0.0 }
 0x3c5   :  { %763 = vmatmul.mubr.msk.f32.vlgmr.msra.gmra.mxu0 %vm254_vm2, %v417_v19 }
 0x485   :  { %v499_v25 = vpop.f32.mrf.mxu0 }
 0x486   :  { %v500_v27 = vadd.f32 %v499_v25, %v429_v24 }
 0x487   :  { %v764_v29 = vpop.f32.mrf.mxu0 }
 0x488   :  { %v503_v30 = vmax.f32 %v500_v27, 0.0 }
 0x48a   :  { %798 = vmatmul.mubr.f32.vlgmr.msra.gmra.mxu1 %v503_v30 }
 0x54a   :  { %v590_v33 = vpop.f32.mrf.mxu1 }
 0x54b   :  { %v591_v0 = vadd.f32 %v590_v33, %v523_v32 }
 0x54c   :  { %v799_v34 = vpop.f32.mrf.mxu1 }
 0x54d   :  { %v622_v35 = vmul.f32 -1.442695, %v591_v0 }
 0x54f   :  { %809 = vpow2.f32 %v622_v35 }
 0x55c   :  { %v810_v36 = vpop.eup %809 }
 0x55d   :  { %v597_v37 = vadd.f32 1.0, %v810_v36 }
 0x55f   :  { %811 = vrcp.f32 %v597_v37 }
 0x56c   :  { %v812_v38 = vpop.eup %811 }
 0x56d   :  { %600 = vst [vmem:[#allocation8] sm:$0xff] %v812_v38 }
 0x56e   :  { %884 = shalt.err (!%p881_p5)
}
 0x56f   :  { %611 = dma.vmem_to_hbm [thread:$0]  %s609_s19, 256, %s1213_s9, [#allocation4]  }
 0x570   :  { %897 = dma.done.wait [#allocation4], 256  }
 0x571   :  { %898 = vsyncadd [#allocation4], 4294967040 }
 0x572   :  { %615 = vsyncpa [#allocation3], 1 }
 0x573   :  { %616 = vsyncpa [#allocation6], 1 }
 0x574   :  { %617 = vsyncpa [#allocation4], 1 }

</bundles_post_ra>
